<compile_context>
chip_gen: v6e
topology: v6e:2x2x1
jax: 0.10.0
libtpu: 0.0.40
codegen_flags: <defaults>
</compile_context>

<pallas_src>
import jax
import jax.numpy as jnp
from jax.experimental import pallas as pl
from jax.experimental.pallas import tpu as pltpu


def _round_up(x, m):
    return (x + m - 1) // m * m


def _model_base_kernel(x_ref, w1_ref, b1_ref, w2_ref, b2_ref, out_ref):
    """Fused forward for one batch tile:
       logits = log_softmax(relu(x @ w1 + b1) @ w2 + b2)

    x_ref is a (TB, D_in) bf16 tile of the batch; w1/b1/w2/b2 stay VMEM-resident
    across grid steps. Matmuls run bf16 on the MXU with f32 accumulation;
    bias/relu/exp/log stay in f32 on VPU/EUP.
    """
    x = x_ref[...]                                   # (TB, D_p)   bf16
    w1 = w1_ref[...]                                 # (D_p, H_p)  bf16
    b1 = b1_ref[...]                                 # (1, H_p)    f32
    w2 = w2_ref[...]                                 # (H_p, C_p)  bf16
    b2 = b2_ref[...]                                 # (1, C_p)    f32

    # hidden layer (MXU bf16 -> f32 acc, then VPU bias + relu in f32)
    h = jnp.dot(x, w1, preferred_element_type=jnp.float32) + b1
    h = jnp.maximum(h, 0.0)

    # class scores, lane-dense padded to C_p=128 (padded cols carry -1e30 bias)
    o = jnp.dot(h.astype(jnp.bfloat16), w2, preferred_element_type=jnp.float32) + b2

    # logits_from_net_output: numerically-stable log_softmax along classes.
    # Padded columns are ~-1e30 so exp() underflows to 0 and they do not perturb
    # the real logits.
    m = jnp.max(o, axis=-1, keepdims=True)
    e = jnp.exp(o - m)
    lse = jnp.log(jnp.sum(e, axis=-1, keepdims=True)) + m
    out_ref[...] = o - lse


def model_base_forward(x_nchw, w1, b1, w2, b2, *, tb=128):
    """Wrapper: NCHW -> flatten -> pad/cast -> batch-tiled fused Pallas MLP head."""
    B = x_nchw.shape[0]
    x_flat = x_nchw.reshape(B, -1).astype(jnp.float32)       # (B, C*H*W)
    D_in = x_flat.shape[1]
    H = w1.shape[1]
    C = w2.shape[1]

    # Lane/sublane-friendly padded dims.
    D_p = _round_up(D_in, 128)
    H_p = _round_up(H, 128)
    C_p = _round_up(C, 128)                 # lane-dense output stores
    TB = min(tb, _round_up(B, 8))           # batch tile, >= 8 f32 sublanes
    B_p = _round_up(B, TB)

    # Pad + cast matmul operands to bf16 (f32 accumulation happens in-kernel).
    x_p = jnp.zeros((B_p, D_p), jnp.bfloat16).at[:B, :D_in].set(
        x_flat.astype(jnp.bfloat16))
    w1_p = jnp.zeros((D_p, H_p), jnp.bfloat16).at[:D_in, :H].set(
        w1.astype(jnp.bfloat16))
    b1_p = jnp.zeros((1, H_p), jnp.float32).at[:, :H].set(b1.astype(jnp.float32))
    w2_p = jnp.zeros((H_p, C_p), jnp.bfloat16).at[:H, :C].set(
        w2.astype(jnp.bfloat16))
    # Padded class columns get a huge negative bias so they vanish in log_softmax.
    b2_p = jnp.full((1, C_p), -1e30, jnp.float32).at[:, :C].set(
        b2.astype(jnp.float32))

    grid = (B_p // TB,)

    flops = 2 * B_p * D_p * H_p + 2 * B_p * H_p * C_p
    bytes_accessed = (x_p.size * 2 + w1_p.size * 2 + b1_p.size * 4
                      + w2_p.size * 2 + b2_p.size * 4 + B_p * C_p * 4)
    cost = pl.CostEstimate(flops=flops,
                           transcendentals=B_p * C_p + B_p,
                           bytes_accessed=bytes_accessed)

    out_p = pl.pallas_call(
        _model_base_kernel,
        out_shape=jax.ShapeDtypeStruct((B_p, C_p), jnp.float32),
        grid=grid,
        in_specs=[
            pl.BlockSpec((TB, D_p), lambda i: (i, 0)),    # batch-tiled activations
            pl.BlockSpec((D_p, H_p), lambda i: (0, 0)),   # resident weights
            pl.BlockSpec((1, H_p), lambda i: (0, 0)),
            pl.BlockSpec((H_p, C_p), lambda i: (0, 0)),
            pl.BlockSpec((1, C_p), lambda i: (0, 0)),
        ],
        out_specs=pl.BlockSpec((TB, C_p), lambda i: (i, 0)),
        compiler_params=pltpu.CompilerParams(
            dimension_semantics=("parallel",),
            vmem_limit_bytes=64 * 1024 * 1024,
        ),
        cost_estimate=cost,
    )(x_p, w1_p, b1_p, w2_p, b2_p)

    # Strip batch/class padding.
    return out_p[:B, :C]


if __name__ == "__main__":
    # Small shapes consistent with an image-classification ModelBase.
    B, C_in, S = 2, 4, 16          # input: (2, 4, 16, 16) NCHW
    HIDDEN = 32
    N_CLASSES = 10

    key = jax.random.PRNGKey(0)
    kx, k1, k2 = jax.random.split(key, 3)

    x = jax.random.normal(kx, (B, C_in, S, S), dtype=jnp.float32)

    D_in = C_in * S * S
    # Deterministic synthetic parameters (scaled like nn.Linear default-ish init).
    w1 = jax.random.normal(k1, (D_in, HIDDEN), dtype=jnp.float32) * (1.0 / jnp.sqrt(D_in))
    b1 = jnp.zeros((1, HIDDEN), dtype=jnp.float32)
    w2 = jax.random.normal(k2, (HIDDEN, N_CLASSES), dtype=jnp.float32) * (1.0 / jnp.sqrt(HIDDEN))
    b2 = jnp.zeros((1, N_CLASSES), dtype=jnp.float32)

    logits = model_base_forward(x, w1, b1, w2, b2)
    logits = jax.block_until_ready(logits)

    # Plain-JAX reference mirroring the kernel's bf16-matmul / f32-accumulate math.
    xf = x.reshape(B, -1).astype(jnp.float32)
    h_ref = jnp.dot(xf.astype(jnp.bfloat16), w1.astype(jnp.bfloat16),
                    preferred_element_type=jnp.float32) + b1
    h_ref = jnp.maximum(h_ref, 0.0)
    o_ref = jnp.dot(h_ref.astype(jnp.bfloat16), w2.astype(jnp.bfloat16),
                    preferred_element_type=jnp.float32) + b2
    ref = jax.nn.log_softmax(o_ref, axis=-1)

    assert logits.shape == (B, N_CLASSES)
    assert jnp.allclose(logits, ref, atol=1e-4, rtol=1e-4), (
        float(jnp.max(jnp.abs(logits - ref))))

    print("KERNEL_OK")
</pallas_src>

<mosaic_0001>
module attributes {stable_mosaic.version = 11 : i64} {
  func.func @_model_base_kernel(%arg0: i32, %arg1: memref<8x1024xbf16, #tpu.memory_space<vmem>>, %arg2: memref<1024x128xbf16, #tpu.memory_space<vmem>>, %arg3: memref<1x128xf32, #tpu.memory_space<vmem>>, %arg4: memref<128x128xbf16, #tpu.memory_space<vmem>>, %arg5: memref<1x128xf32, #tpu.memory_space<vmem>>, %arg6: memref<8x128xf32, #tpu.memory_space<vmem>>) attributes {dimension_semantics = [#tpu.dimension_semantics<parallel>], iteration_bounds = array<i64: 1>, scalar_prefetch = 0 : i64, scratch_operands = 0 : i64, tpu.core_type = #tpu.core_type<tc>, window_params = [{transform_indices = @transform_0, window_bounds = array<i64: 8, 1024>}, {pipeline_mode = #tpu.pipeline_mode<synchronous>, transform_indices = @transform_1, window_bounds = array<i64: 1024, 128>}, {pipeline_mode = #tpu.pipeline_mode<synchronous>, transform_indices = @transform_2, window_bounds = array<i64: 1, 128>}, {pipeline_mode = #tpu.pipeline_mode<synchronous>, transform_indices = @transform_3, window_bounds = array<i64: 128, 128>}, {pipeline_mode = #tpu.pipeline_mode<synchronous>, transform_indices = @transform_4, window_bounds = array<i64: 1, 128>}, {transform_indices = @transform_5, window_bounds = array<i64: 8, 128>}]} {
    %c0 = arith.constant 0 : index
    %c0_0 = arith.constant 0 : index
    %0 = vector.load %arg1[%c0, %c0_0] : memref<8x1024xbf16, #tpu.memory_space<vmem>>, vector<8x1024xbf16>
    %c0_1 = arith.constant 0 : index
    %c0_2 = arith.constant 0 : index
    %1 = vector.load %arg2[%c0_1, %c0_2] : memref<1024x128xbf16, #tpu.memory_space<vmem>>, vector<1024x128xbf16>
    %c0_3 = arith.constant 0 : index
    %c0_4 = arith.constant 0 : index
    %2 = vector.load %arg3[%c0_3, %c0_4] : memref<1x128xf32, #tpu.memory_space<vmem>>, vector<1x128xf32>
    %c0_5 = arith.constant 0 : index
    %c0_6 = arith.constant 0 : index
    %3 = vector.load %arg4[%c0_5, %c0_6] : memref<128x128xbf16, #tpu.memory_space<vmem>>, vector<128x128xbf16>
    %c0_7 = arith.constant 0 : index
    %c0_8 = arith.constant 0 : index
    %4 = vector.load %arg5[%c0_7, %c0_8] : memref<1x128xf32, #tpu.memory_space<vmem>>, vector<1x128xf32>
    %cst = arith.constant dense<0.000000e+00> : vector<8x128xf32>
    %5 = tpu.matmul %0, %1, %cst {dimension_numbers = #tpu.dot_dimension_numbers<[1], [0], [0], [1], [0, 0, 1, 1], [], []>} : vector<8x1024xbf16>, vector<1024x128xbf16>, vector<8x128xf32> -> vector<8x128xf32>
    %6 = vector.broadcast %2 : vector<1x128xf32> to vector<8x128xf32>
    %7 = arith.addf %5, %6 : vector<8x128xf32>
    %cst_9 = arith.constant 0.000000e+00 : f32
    %8 = vector.broadcast %cst_9 : f32 to vector<8x128xf32>
    %9 = arith.maximumf %7, %8 : vector<8x128xf32>
    %10 = arith.truncf %9 : vector<8x128xf32> to vector<8x128xbf16>
    %cst_10 = arith.constant dense<0.000000e+00> : vector<8x128xf32>
    %11 = tpu.matmul %10, %3, %cst_10 {dimension_numbers = #tpu.dot_dimension_numbers<[1], [0], [0], [1], [0, 0, 1, 1], [], []>} : vector<8x128xbf16>, vector<128x128xbf16>, vector<8x128xf32> -> vector<8x128xf32>
    %12 = vector.broadcast %4 : vector<1x128xf32> to vector<8x128xf32>
    %13 = arith.addf %11, %12 : vector<8x128xf32>
    %cst_11 = arith.constant dense<0xFF800000> : vector<8xf32>
    %14 = vector.multi_reduction <maximumf>, %13, %cst_11 [1] : vector<8x128xf32> to vector<8xf32>
    %15 = vector.shape_cast %14 : vector<8xf32> to vector<8x1xf32>
    %16 = vector.broadcast %15 : vector<8x1xf32> to vector<8x128xf32>
    %17 = arith.subf %13, %16 : vector<8x128xf32>
    %18 = math.exp %17 : vector<8x128xf32>
    %cst_12 = arith.constant dense<0.000000e+00> : vector<8xf32>
    %19 = vector.multi_reduction <add>, %18, %cst_12 [1] : vector<8x128xf32> to vector<8xf32>
    %20 = vector.shape_cast %19 : vector<8xf32> to vector<8x1xf32>
    %21 = math.log %20 : vector<8x1xf32>
    %22 = arith.addf %21, %15 : vector<8x1xf32>
    %23 = vector.broadcast %22 : vector<8x1xf32> to vector<8x128xf32>
    %24 = arith.subf %13, %23 : vector<8x128xf32>
    %c0_13 = arith.constant 0 : index
    %c0_14 = arith.constant 0 : index
    %25 = vector.load %arg6[%c0_13, %c0_14] : memref<8x128xf32, #tpu.memory_space<vmem>>, vector<8x128xf32>
    tpu.vector_store %arg6[%c0_13, %c0_14], %24 {strides = array<i32>} : memref<8x128xf32, #tpu.memory_space<vmem>>, vector<8x128xf32>,
    return
  }
  func.func @transform_0(%arg0: i32) -> (i32, i32) {
    %c0_i32 = arith.constant 0 : i32
    %c0_i32_0 = arith.constant 0 : i32
    return %arg0, %c0_i32 : i32, i32
  }
  func.func @transform_1(%arg0: i32) -> (i32, i32) {
    %c0_i32 = arith.constant 0 : i32
    %c0_i32_0 = arith.constant 0 : i32
    %c0_i32_1 = arith.constant 0 : i32
    return %c0_i32, %c0_i32_0 : i32, i32
  }
  func.func @transform_2(%arg0: i32) -> (i32, i32) {
    %c0_i32 = arith.constant 0 : i32
    %c0_i32_0 = arith.constant 0 : i32
    %c0_i32_1 = arith.constant 0 : i32
    return %c0_i32, %c0_i32_0 : i32, i32
  }
  func.func @transform_3(%arg0: i32) -> (i32, i32) {
    %c0_i32 = arith.constant 0 : i32
    %c0_i32_0 = arith.constant 0 : i32
    %c0_i32_1 = arith.constant 0 : i32
    return %c0_i32, %c0_i32_0 : i32, i32
  }
  func.func @transform_4(%arg0: i32) -> (i32, i32) {
    %c0_i32 = arith.constant 0 : i32
    %c0_i32_0 = arith.constant 0 : i32
    %c0_i32_1 = arith.constant 0 : i32
    return %c0_i32, %c0_i32_0 : i32, i32
  }
  func.func @transform_5(%arg0: i32) -> (i32, i32) {
    %c0_i32 = arith.constant 0 : i32
    %c0_i32_0 = arith.constant 0 : i32
    return %arg0, %c0_i32 : i32, i32
  }
}

</mosaic_0001>

<bundles_post_ra>
// kernel: tpu_custom_call.1
= control target key start
LH: loop header
LB: loop body
LE: loop exit
PB: predicated region body
PF: predicated region fallthrough
CT: control target
= control target key end

     0   :  { %10 = vsyncpa [#allocation3], 0  ;;  %s1346_s0 = inlined_call_operand.hbm [shape: bf16[8,1024], index: 0, kind: input, shape index: {}]   ;;  %s1347_s1 = inlined_call_operand.hbm [shape: bf16[1024,128], index: 1, kind: input, shape index: {}]   ;;  %s1348_s2 = inlined_call_operand.vmem [shape: f32[1,128], index: 2, kind: input, shape index: {}]   ;;  %s1349_s3 = inlined_call_operand.hbm [shape: bf16[128,128], index: 3, kind: input, shape index: {}]   ;;  %s1350_s4 = inlined_call_operand.vmem [shape: f32[1,128], index: 4, kind: input, shape index: {}]   ;;  %s1351_s5 = inlined_call_operand.hbm [shape: f32[8,128], index: 5, kind: output, shape index: {}]  }
   0x1   :  { %11 = vsyncpa [#allocation6], 0 }
   0x2   :  { %12 = vsyncpa [#allocation4], 0  ;;  %s1290_s18 = smov [#allocation5]  }
   0x3   :  { %s28_s19 = sshll.u32 %s1290_s18, 4  ;;  %s29_s19 = int_to_ptr.vmem [resolvable:$true] %s28_s19 }
   0x4   :  { %s1212_s20 = scalar_lea.vmem %s29_s19, 8192  ;;  %p1217_p1 = scmp.lt.s32.totalorder %s29_s19, %s29_s19 }
   0x5   :  { %p1213_p0 = scmp.ne.s32.totalorder %s29_s19, %s1212_s20  ;;  %p1218_p2 = scmp.lt.s32.totalorder %s1212_s20, %s1212_s20 }
   0x7   :  { %p1219_p3 = por %p1218_p2, %p1217_p1 }
   0x9   :  { %p1220_p4 = pnand %p1219_p3, %p1213_p0 }
   0xb   :  { %1223 = shalt.err (!%p1220_p4)
}
   0xc   :  { %s1291_s21 = smov 64   ;;  %s1292_s22 = smov 4  }
   0xd   :  { %34 = dma.hbm_to_vmem [thread:$0]  %s1347_s1, 8192, %s29_s19, [#allocation6], %s1291_s21, %s1291_s21, %s1292_s22  }
   0xe   :  { %s1293_s25 = smov [#allocation2]   ;;  %s1294_s27 = smov [#allocation7]  }
   0xf   :  { %s19_s26 = sshll.u32 %s1293_s25, 4  ;;  %s42_s28 = sshll.u32 %s1294_s27, 4  ;;  %s20_s26 = int_to_ptr.vmem [resolvable:$true] %s19_s26  ;;  %s43_s28 = int_to_ptr.vmem [resolvable:$true] %s42_s28 }
  0x10   :  { %s1232_s29 = scalar_lea.vmem %s20_s26, 512  ;;  %p1237_p6 = scmp.lt.s32.totalorder %s20_s26, %s20_s26 }
  0x11   :  { %p1233_p5 = scmp.ne.s32.totalorder %s20_s26, %s1232_s29  ;;  %p1238_p7 = scmp.lt.s32.totalorder %s1232_s29, %s1232_s29 }
  0x13   :  { %p1239_p8 = por %p1238_p7, %p1237_p6 }
  0x15   :  { %p1240_p9 = pnand %p1239_p8, %p1233_p5 }
  0x17   :  { %1243 = shalt.err (!%p1240_p9)
}
  0x18   :  { %22 = dma.hbm_to_vmem [thread:$0]  %s1346_s0, 512, %s20_s26, [#allocation3]  }
  0x19   :  { %s1252_s7 = scalar_lea.vmem %s43_s28, 1024  ;;  %p1257_p11 = scmp.lt.s32.totalorder %s43_s28, %s43_s28 }
  0x1a   :  { %p1253_p10 = scmp.ne.s32.totalorder %s43_s28, %s1252_s7  ;;  %p1258_p12 = scmp.lt.s32.totalorder %s1252_s7, %s1252_s7 }
  0x1c   :  { %p1259_p13 = por %p1258_p12, %p1257_p11 }
  0x1e   :  { %p1260_p0 = pnand %p1259_p13, %p1253_p10 }
  0x20   :  { %1263 = shalt.err (!%p1260_p0)
}
  0x21   :  { %48 = dma.hbm_to_vmem [thread:$0]  %s1349_s3, 1024, %s43_s28, [#allocation6], %s1291_s21, %s1291_s21, %s1292_s22  }
  0x22   :  { %1284 = dma.done.wait [#allocation3], 512  }
  0x23   :  { %1285 = vsyncadd [#allocation3], 4294966784 }
  0x24   :  { %1286 = dma.done.wait [#allocation6], 9216  }
  0x25   :  { %1287 = vsyncadd [#allocation6], 4294958080  ;;  %v1120_v0 = vld [vmem:[#allocation5 + $0x78] sm:$0xff]   ;;  %v1124_v4 = vld [vmem:[#allocation5 + $0x70] sm:$0xff]   ;;  %vm1296_vm0 = vmmov 0   ;;  %s1297_s10 = smov [#allocation8]  }
  0x26   :  { %v1121_v1 = vld [vmem:[#allocation5 + $0xf8] sm:$0xff]   ;;  %995 = vmatprep.subr.bf16.mxu0 %v1120_v0  ;;  %v1125_v5 = vld [vmem:[#allocation5 + $0xf0] sm:$0xff]   ;;  %v1128_v8 = vld [vmem:[#allocation5 + $0x68] sm:$0xff]   ;;  %s903_s11 = sshll.u32 %s1297_s10, 4  ;;  %s904_s11 = int_to_ptr.vmem [resolvable:$true] %s903_s11 }
  0x27   :  { %v1122_v2 = vld [vmem:[#allocation5 + $0x38] sm:$0xff]   ;;  %1017 = vmatprep.subr.bf16.mxu1 %v1121_v1  ;;  %v1126_v6 = vld [vmem:[#allocation5 + $0x30] sm:$0xff]   ;;  %v1129_v9 = vld [vmem:[#allocation5 + $0xe8] sm:$0xff]   ;;  %p1269_p2 = scmp.lt.s32.totalorder %s904_s11, %s904_s11 }
  0x28   :  { %v1123_v3 = vld [vmem:[#allocation5 + $0xb8] sm:$0xff]   ;;  %996 = vmatpush3.bf16.msra.mxu0 %v1122_v2  ;;  %v1127_v7 = vld [vmem:[#allocation5 + $0xb0] sm:$0xff]   ;;  %v1130_v10 = vld [vmem:[#allocation5 + $0x28] sm:$0xff]  }
  0x29   :  { %1018 = vmatpush3.bf16.msra.mxu1 %v1123_v3  ;;  %997 = vmatprep.subr.bf16.mxu0 %v1124_v4  ;;  %v1131_v11 = vld [vmem:[#allocation5 + $0xa8] sm:$0xff]   ;;  %v1132_v12 = vld [vmem:[#allocation5 + $0x60] sm:$0xff]   ;;  %v1136_v16 = vld [vmem:[#allocation5 + $0x58] sm:$0xff]  }
  0x2a   :  { %1019 = vmatprep.subr.bf16.mxu1 %v1125_v5  ;;  %v1133_v13 = vld [vmem:[#allocation5 + $0xe0] sm:$0xff]   ;;  %v1137_v17 = vld [vmem:[#allocation5 + $0xd8] sm:$0xff]   ;;  %v1140_v20 = vld [vmem:[#allocation5 + $0x50] sm:$0xff]  }
  0x2b   :  { %v1134_v14 = vld [vmem:[#allocation5 + $0x20] sm:$0xff]   ;;  %v1138_v18 = vld [vmem:[#allocation5 + $0x18] sm:$0xff]   ;;  %v1141_v21 = vld [vmem:[#allocation5 + $0xd0] sm:$0xff]  }
  0x2c   :  { %998 = vmatpush3.bf16.msra.mxu0 %v1126_v6  ;;  %v1135_v15 = vld [vmem:[#allocation5 + $0xa0] sm:$0xff]   ;;  %v1139_v19 = vld [vmem:[#allocation5 + $0x98] sm:$0xff]   ;;  %v1142_v22 = vld [vmem:[#allocation5 + $0x10] sm:$0xff]  }
  0x2d   :  { %1020 = vmatpush3.bf16.msra.mxu1 %v1127_v7  ;;  %999 = vmatprep.subr.bf16.mxu0 %v1128_v8  ;;  %v1143_v23 = vld [vmem:[#allocation5 + $0x90] sm:$0xff]   ;;  %v1144_v24 = vld [vmem:[#allocation5 + $0x48] sm:$0xff]   ;;  %v1148_v28 = vld [vmem:[#allocation5 + $0x40] sm:$0xff]  }
  0x2e   :  { %1021 = vmatprep.subr.bf16.mxu1 %v1129_v9  ;;  %v1145_v25 = vld [vmem:[#allocation5 + $0xc8] sm:$0xff]   ;;  %v1149_v29 = vld [vmem:[#allocation5 + $0xc0] sm:$0xff]   ;;  %v1156_v38 = vld [vmem:[#allocation5 + $0x178] sm:$0xff]  }
  0x2f   :  { %v1146_v26 = vld [vmem:[#allocation5 + $0x8] sm:$0xff]   ;;  %v1150_v30 = vld [vmem:[#allocation5] sm:$0xff]   ;;  %v1157_v39 = vld [vmem:[#allocation5 + $0x1f8] sm:$0xff]  }
  0x30   :  { %1000 = vmatpush3.bf16.msra.mxu0 %v1130_v10  ;;  %v1147_v27 = vld [vmem:[#allocation5 + $0x88] sm:$0xff]   ;;  %v1151_v31 = vld [vmem:[#allocation5 + $0x80] sm:$0xff]   ;;  %v1158_v40 = vld [vmem:[#allocation5 + $0x138] sm:$0xff]  }
  0x31   :  { %1022 = vmatpush3.bf16.msra.mxu1 %v1131_v11  ;;  %1001 = vmatprep.subr.bf16.mxu0 %v1132_v12  ;;  %v61_v32 = vld [vmem:[#allocation2] sm:$0xff]  ;;  %v62_v33 = vld [vmem:[#allocation2 + $0x8] sm:$0xff]  ;;  %v1159_v41 = vld [vmem:[#allocation5 + $0x1b8] sm:$0xff]  }
  0x32   :  { %1023 = vmatprep.subr.bf16.mxu1 %v1133_v13  ;;  %v914_v34 = vcombine.low %v61_v32, %v61_v32  ;;  %v915_v35 = vcombine.high %v61_v32, %v61_v32  ;;  %v916_v36 = vcombine.low %v62_v33, %v62_v33  ;;  %v917_v37 = vcombine.high %v62_v33, %v62_v33  ;;  %v1160_v42 = vld [vmem:[#allocation5 + $0x170] sm:$0xff]   ;;  %v1164_v46 = vld [vmem:[#allocation5 + $0x168] sm:$0xff]   ;;  %v1168_v50 = vld [vmem:[#allocation5 + $0x160] sm:$0xff]  }
  0x33   :  { %v1161_v43 = vld [vmem:[#allocation5 + $0x1f0] sm:$0xff]   ;;  %v1165_v47 = vld [vmem:[#allocation5 + $0x1e8] sm:$0xff]   ;;  %v1169_v51 = vld [vmem:[#allocation5 + $0x1e0] sm:$0xff]   ;;  %v1295_v13 = vmov 0.0  }
  0x34   :  { %1002 = vmatpush3.bf16.msra.mxu0 %v1134_v14  ;;  %661 = vmatprep.mubr.bf16.mxu0 %v915_v35  ;;  %v1162_v44 = vld [vmem:[#allocation5 + $0x130] sm:$0xff]   ;;  %v1166_v48 = vld [vmem:[#allocation5 + $0x128] sm:$0xff]   ;;  %v1170_v52 = vld [vmem:[#allocation5 + $0x120] sm:$0xff]  }
  0x35   :  { %1024 = vmatpush3.bf16.msra.mxu1 %v1135_v15  ;;  %1003 = vmatprep.subr.bf16.mxu0 %v1136_v16  ;;  %v1163_v45 = vld [vmem:[#allocation5 + $0x1b0] sm:$0xff]   ;;  %v1167_v49 = vld [vmem:[#allocation5 + $0x1a8] sm:$0xff]   ;;  %v1171_v53 = vld [vmem:[#allocation5 + $0x1a0] sm:$0xff]  }
  0x36   :  { %1025 = vmatprep.subr.bf16.mxu1 %v1137_v17  ;;  %701 = vmatprep.mubr.bf16.mxu1 %v917_v37  ;;  %v1172_v54 = vld [vmem:[#allocation5 + $0x158] sm:$0xff]   ;;  %v1176_v58 = vld [vmem:[#allocation5 + $0x150] sm:$0xff]   ;;  %v1180_v62 = vld [vmem:[#allocation5 + $0x148] sm:$0xff]  }
  0x37   :  { %v1173_v55 = vld [vmem:[#allocation5 + $0x1d8] sm:$0xff]   ;;  %v1177_v59 = vld [vmem:[#allocation5 + $0x1d0] sm:$0xff]   ;;  %v1181_v63 = vld [vmem:[#allocation5 + $0x1c8] sm:$0xff]  }
  0x38   :  { %1004 = vmatpush3.bf16.msra.mxu0 %v1138_v18  ;;  %v1174_v56 = vld [vmem:[#allocation5 + $0x118] sm:$0xff]   ;;  %v1178_v60 = vld [vmem:[#allocation5 + $0x110] sm:$0xff]   ;;  %v1182_v0 = vld [vmem:[#allocation5 + $0x108] sm:$0xff]  }
  0x39   :  { %1026 = vmatpush3.bf16.msra.mxu1 %v1139_v19  ;;  %1005 = vmatprep.subr.bf16.mxu0 %v1140_v20  ;;  %v1175_v57 = vld [vmem:[#allocation5 + $0x198] sm:$0xff]   ;;  %v1179_v61 = vld [vmem:[#allocation5 + $0x190] sm:$0xff]   ;;  %v1183_v1 = vld [vmem:[#allocation5 + $0x188] sm:$0xff]  }
  0x3a   :  { %1027 = vmatprep.subr.bf16.mxu1 %v1141_v21  ;;  %v1184_v2 = vld [vmem:[#allocation5 + $0x140] sm:$0xff]   ;;  %v63_v6 = vld [vmem:[#allocation2 + $0x10] sm:$0xff]  ;;  %v64_v9 = vld [vmem:[#allocation2 + $0x18] sm:$0xff] }
  0x3b   :  { %v1185_v3 = vld [vmem:[#allocation5 + $0x1c0] sm:$0xff]   ;;  %v918_v7 = vcombine.low %v63_v6, %v63_v6  ;;  %v919_v8 = vcombine.high %v63_v6, %v63_v6  ;;  %v920_v10 = vcombine.low %v64_v9, %v64_v9  ;;  %v921_v11 = vcombine.high %v64_v9, %v64_v9  ;;  %v1192_v12 = vld [vmem:[#allocation7 + $0x38] sm:$0xff]   ;;  %v1193_v14 = vld [vmem:[#allocation7 + $0x30] sm:$0xff]  }
  0x3c   :  { %1006 = vmatpush3.bf16.msra.mxu0 %v1142_v22  ;;  %v1186_v4 = vld [vmem:[#allocation5 + $0x100] sm:$0xff]   ;;  %v1194_v15 = vld [vmem:[#allocation7 + $0x28] sm:$0xff]   ;;  %v1196_v17 = vld [vmem:[#allocation7 + $0x18] sm:$0xff]  }
  0x3d   :  { %1028 = vmatpush3.bf16.msra.mxu1 %v1143_v23  ;;  %1007 = vmatprep.subr.bf16.mxu0 %v1144_v24  ;;  %v1187_v5 = vld [vmem:[#allocation5 + $0x180] sm:$0xff]   ;;  %v1197_v18 = vld [vmem:[#allocation7 + $0x10] sm:$0xff]   ;;  %v1198_v19 = vld [vmem:[#allocation7 + $0x8] sm:$0xff]  }
  0x3e   :  { %1029 = vmatprep.subr.bf16.mxu1 %v1145_v25  ;;  %v1195_v16 = vld [vmem:[#allocation7 + $0x20] sm:$0xff]  }
  0x3f   :  { %v1199_v20 = vld [vmem:[#allocation7] sm:$0xff]  }
  0x40   :  { %1008 = vmatpush3.bf16.msra.mxu0 %v1146_v26 }
  0x41   :  { %1030 = vmatpush3.bf16.msra.mxu1 %v1147_v27  ;;  %1009 = vmatprep.subr.bf16.mxu0 %v1148_v28 }
  0x42   :  { %1031 = vmatprep.subr.bf16.mxu1 %v1149_v29 }
  0x44   :  { %1010 = vmatpush3.bf16.msra.mxu0 %v1150_v30  ;;  %v913_v30 = vld [vmem:[%s1348_s2] ss:$0 sm:$0xff] }
  0x45   :  { %1032 = vmatpush3.bf16.msra.mxu1 %v1151_v31  ;;  %1039 = vmatprep.subr.bf16.mxu0 %v1156_v38 }
  0x46   :  { %1061 = vmatprep.subr.bf16.mxu1 %v1157_v39 }
  0x47   :  { %662 = vmatmul.mubr.bf16.vlgmr.msra.gmra.mxu0 %v914_v34 }
  0x48   :  { %702 = vmatmul.mubr.bf16.vlgmr.msra.gmra.mxu1 %v916_v36  ;;  %1040 = vmatpush3.bf16.msra.mxu0 %v1158_v40 }
  0x49   :  { %1062 = vmatpush3.bf16.msra.mxu1 %v1159_v41  ;;  %1041 = vmatprep.subr.bf16.mxu0 %v1160_v42 }
  0x4a   :  { %1063 = vmatprep.subr.bf16.mxu1 %v1161_v43  ;;  %741 = vmatprep.mubr.bf16.mxu0 %v919_v8 }
  0x4b   :  { %781 = vmatprep.mubr.bf16.mxu1 %v921_v11 }
  0x4c   :  { %1042 = vmatpush3.bf16.msra.mxu0 %v1162_v44 }
  0x4d   :  { %1064 = vmatpush3.bf16.msra.mxu1 %v1163_v45  ;;  %1043 = vmatprep.subr.bf16.mxu0 %v1164_v46 }
  0x4e   :  { %1065 = vmatprep.subr.bf16.mxu1 %v1165_v47 }
  0x50   :  { %1044 = vmatpush3.bf16.msra.mxu0 %v1166_v48  ;;  %v986_v48 = vld [vmem:[%s1350_s4] ss:$0 sm:$0xff]  ;;  %s1264_s4 = scalar_lea.vmem %s904_s11, 128 }
  0x51   :  { %1066 = vmatpush3.bf16.msra.mxu1 %v1167_v49  ;;  %1045 = vmatprep.subr.bf16.mxu0 %v1168_v50  ;;  %p1265_p1 = scmp.ne.s32.totalorder %s904_s11, %s1264_s4  ;;  %p1270_p3 = scmp.lt.s32.totalorder %s1264_s4, %s1264_s4 }
  0x52   :  { %1067 = vmatprep.subr.bf16.mxu1 %v1169_v51 }
  0x53   :  { %p1271_p4 = por %p1270_p3, %p1269_p2 }
  0x54   :  { %1046 = vmatpush3.bf16.msra.mxu0 %v1170_v52 }
  0x55   :  { %1068 = vmatpush3.bf16.msra.mxu1 %v1171_v53  ;;  %1047 = vmatprep.subr.bf16.mxu0 %v1172_v54  ;;  %p1272_p5 = pnand %p1271_p4, %p1265_p1 }
  0x56   :  { %1069 = vmatprep.subr.bf16.mxu1 %v1173_v55 }
  0x58   :  { %1048 = vmatpush3.bf16.msra.mxu0 %v1174_v56 }
  0x59   :  { %1070 = vmatpush3.bf16.msra.mxu1 %v1175_v57  ;;  %1049 = vmatprep.subr.bf16.mxu0 %v1176_v58 }
  0x5a   :  { %1071 = vmatprep.subr.bf16.mxu1 %v1177_v59 }
  0x5c   :  { %1050 = vmatpush3.bf16.msra.mxu0 %v1178_v60 }
  0x5d   :  { %1072 = vmatpush3.bf16.msra.mxu1 %v1179_v61  ;;  %1051 = vmatprep.subr.bf16.mxu0 %v1180_v62 }
  0x5e   :  { %1073 = vmatprep.subr.bf16.mxu1 %v1181_v63 }
  0x60   :  { %1052 = vmatpush3.bf16.msra.mxu0 %v1182_v0 }
  0x61   :  { %1074 = vmatpush3.bf16.msra.mxu1 %v1183_v1  ;;  %1053 = vmatprep.subr.bf16.mxu0 %v1184_v2 }
  0x62   :  { %1075 = vmatprep.subr.bf16.mxu1 %v1185_v3 }
  0x64   :  { %1054 = vmatpush3.bf16.msra.mxu0 %v1186_v4 }
  0x65   :  { %1076 = vmatpush3.bf16.msra.mxu1 %v1187_v5  ;;  %1092 = vmatprep.subr.bf16.mxu0 %v1295_v13 }
  0x67   :  { %742 = vmatmul.mubr.bf16.vlgmr.msra.gmra.mxu0 %v918_v7 }
  0x68   :  { %782 = vmatmul.mubr.bf16.vlgmr.msra.gmra.mxu1 %v920_v10  ;;  %1093 = vmatpush3.bf16.msra.mxu0 %v1192_v12 }
  0x69   :  { %1094 = vmatprep.subr.bf16.mxu0 %v1295_v13  ;;  %1108 = vmatprep.mubr.msk.bf16.mxu0 %vm1296_vm0, %v1295_v13 }
  0x6c   :  { %1095 = vmatpush3.bf16.msra.mxu0 %v1193_v14 }
  0x6d   :  { %1096 = vmatprep.subr.bf16.mxu0 %v1295_v13 }
  0x70   :  { %1097 = vmatpush3.bf16.msra.mxu0 %v1194_v15 }
  0x71   :  { %1098 = vmatprep.subr.bf16.mxu0 %v1295_v13 }
  0x74   :  { %1099 = vmatpush3.bf16.msra.mxu0 %v1195_v16 }
  0x75   :  { %1100 = vmatprep.subr.bf16.mxu0 %v1295_v13 }
  0x78   :  { %1101 = vmatpush3.bf16.msra.mxu0 %v1196_v17 }
  0x79   :  { %1102 = vmatprep.subr.bf16.mxu0 %v1295_v13 }
  0x7c   :  { %1103 = vmatpush3.bf16.msra.mxu0 %v1197_v18 }
  0x7d   :  { %1104 = vmatprep.subr.bf16.mxu0 %v1295_v13 }
  0x80   :  { %1105 = vmatpush3.bf16.msra.mxu0 %v1198_v19 }
  0x81   :  { %1106 = vmatprep.subr.bf16.mxu0 %v1295_v13 }
  0x84   :  { %1107 = vmatpush3.bf16.msra.mxu0 %v1199_v20 }
 0x107   :  { %v1011_v21 = vpop.f32.mrf.mxu0 }
 0x108   :  { %v1033_v22 = vpop.f32.mrf.mxu1 }
 0x109   :  { %v1012_v23 = vpop.f32.mrf.mxu0 }
 0x10a   :  { %v1034_v24 = vpop.f32.mrf.mxu1  ;;  %v1013_v29 = vadd.f32 %v1012_v23, %v1011_v21 }
 0x10b   :  { %v1014_v25 = vpop.f32.mrf.mxu0  ;;  %v1035_v32 = vadd.f32 %v1034_v24, %v1033_v22 }
 0x10c   :  { %v1036_v26 = vpop.f32.mrf.mxu1  ;;  %v664_v31 = vadd.f32 %v1013_v29, %v913_v30 }
 0x10d   :  { %v1015_v27 = vpop.f32.mrf.mxu0 }
 0x10e   :  { %v1037_v28 = vpop.f32.mrf.mxu1  ;;  %v704_v37 = vadd.f32 %v1035_v32, %v664_v31 }
 0x127   :  { %v1055_v33 = vpop.f32.mrf.mxu0 }
 0x128   :  { %v1077_v34 = vpop.f32.mrf.mxu1 }
 0x129   :  { %v1056_v35 = vpop.f32.mrf.mxu0 }
 0x12a   :  { %v1078_v36 = vpop.f32.mrf.mxu1  ;;  %v1057_v38 = vadd.f32 %v1056_v35, %v1055_v33 }
 0x12b   :  { %v1058_v39 = vpop.f32.mrf.mxu0  ;;  %v1079_v42 = vadd.f32 %v1078_v36, %v1077_v34 }
 0x12c   :  { %v1080_v40 = vpop.f32.mrf.mxu1  ;;  %v744_v41 = vadd.f32 %v1057_v38, %v704_v37 }
 0x12d   :  { %v1059_v43 = vpop.f32.mrf.mxu0 }
 0x12e   :  { %v1081_v44 = vpop.f32.mrf.mxu1  ;;  %v784_v45 = vadd.f32 %v1079_v42, %v744_v41 }
 0x130   :  { %v789_v46 = vmax.f32 %v784_v45, 0.0 }
 0x132   :  { %v790_v47 = vpack.c.bf16 %v789_v46, %v789_v46 }
 0x134   :  { %1109 = vmatmul.mubr.bf16.vlgmr.msra.gmra.mxu0 %v790_v47 }
 0x1f4   :  { %v879_v49 = vpop.f32.mrf.mxu0 }
 0x1f5   :  { %v880_v50 = vadd.f32 %v986_v48, %v879_v49 }
 0x1f6   :  { %v1110_v51 = vpop.f32.mrf.mxu0 }
 0x1f7   :  { %885 = vmax.xlane.f32.xlu0 %v880_v50 }
 0x1f8   :  { %v882_v52 = vpop.f32.mrf.mxu0 }
 0x1fa   :  { %v1111_v53 = vpop.f32.mrf.mxu0 }
 0x280   :  { %v886_v54 = vpop.xlane.xlu0 %885 }
 0x281   :  { %v887_v55 = vsub.f32 %v880_v50, %v886_v54 }
 0x283   :  { %v888_v56 = vmul.f32 1.442695, %v887_v55 }
 0x285   :  { %1200 = vpow2.f32 %v888_v56 }
 0x292   :  { %v1201_v57 = vpop.eup %1200 }
 0x293   :  { %890 = vadd.xlane.f32.xlu0 %v1201_v57 }
 0x31c   :  { %v891_v58 = vpop.xlane.xlu0 %890 }
 0x31d   :  { %1202 = vlog2.f32 %v891_v58 }
 0x32a   :  { %v1203_v59 = vpop.eup %1202 }
 0x32b   :  { %v893_v60 = vmul.f32 0.6931472, %v1203_v59 }
 0x32d   :  { %v894_v61 = vadd.f32 %v893_v60, %v886_v54 }
 0x32f   :  { %v895_v62 = vsub.f32 %v880_v50, %v894_v61 }
 0x331   :  { %896 = vst [vmem:[#allocation8] sm:$0xff] %v895_v62 }
 0x332   :  { %1275 = shalt.err (!%p1272_p5)
}
 0x333   :  { %906 = dma.vmem_to_hbm [thread:$0]  %s904_s11, 128, %s1351_s5, [#allocation4]  }
 0x334   :  { %1288 = dma.done.wait [#allocation4], 128  }
 0x335   :  { %1289 = vsyncadd [#allocation4], 4294967168 }
 0x336   :  { %910 = vsyncpa [#allocation3], 1 }
 0x337   :  { %911 = vsyncpa [#allocation6], 1 }
 0x338   :  { %912 = vsyncpa [#allocation4], 1 }

</bundles_post_ra>
